<compile_context>
chip_gen: v7x
topology: tpu7x:2x2x1
jax: 0.10.0
libtpu: 0.0.40
codegen_flags: <defaults>
</compile_context>

<pallas_src>
import jax
import jax.numpy as jnp
from jax import lax
from jax.experimental import pallas as pl
from jax.experimental.pallas import tpu as pltpu

H1 = 128      # hidden1 width (already lane-aligned)
H2P = 128     # hidden2 (64) padded to 128 lanes
NCP = 128     # num_classes (10) padded to 128 lanes
BN_EPS = 1e-5


def ffn_kernel(x_ref, w1_ref, b1_ref, g_ref, beta_ref,
               w2_ref, b2_ref, w3_ref, b3_ref,
               m1_ref, m2_ref, o_ref):
    # linear1 (bf16 x bf16 -> f32 acc) + ReLU
    h1 = jnp.dot(x_ref[...], w1_ref[...],
                 preferred_element_type=jnp.float32) + b1_ref[...]
    h1 = jnp.maximum(h1, 0.0)

    # BatchNorm1d (training mode): single pass -> mean and E[x^2]
    inv_b = jnp.float32(1.0 / h1.shape[0])
    mean = jnp.sum(h1, axis=0, keepdims=True) * inv_b
    mean_sq = jnp.sum(h1 * h1, axis=0, keepdims=True) * inv_b
    var = mean_sq - mean * mean                      # biased variance
    h1 = (h1 - mean) * lax.rsqrt(var + BN_EPS) * g_ref[...] + beta_ref[...]

    # Dropout(p=0.5): mask is pre-scaled to {0.0, 2.0}
    h1 = h1 * m1_ref[...]

    # linear2 + ReLU (padded to 128 output lanes; padded cols stay 0)
    h2 = jnp.dot(h1.astype(jnp.bfloat16), w2_ref[...],
                 preferred_element_type=jnp.float32) + b2_ref[...]
    h2 = jnp.maximum(h2, 0.0)

    # Dropout(p=0.5)
    h2 = h2 * m2_ref[...]

    # output linear (padded to 128 output lanes -> lane-dense full-vreg store)
    out = jnp.dot(h2.astype(jnp.bfloat16), w3_ref[...],
                  preferred_element_type=jnp.float32) + b3_ref[...]
    o_ref[...] = out.astype(o_ref.dtype)


def ffn_forward(x, params, dropout_key, num_classes):
    """x: [B, input_dim] float32. params: padded / pre-transposed (see init_params)."""
    B, _ = x.shape

    # Pre-scaled dropout masks (training mode, p=0.5): keep -> 2.0, drop -> 0.0.
    k1, k2 = jax.random.split(dropout_key)
    m1 = jax.random.bernoulli(k1, 0.5, (B, H1)).astype(jnp.float32) * 2.0
    m2 = jax.random.bernoulli(k2, 0.5, (B, H2P)).astype(jnp.float32) * 2.0

    x_bf16 = x.astype(jnp.bfloat16)

    full = lambda arr: pl.BlockSpec(arr.shape, lambda i: (0,) * arr.ndim)
    operands = (x_bf16,
                params["w1"], params["b1"], params["gamma"], params["beta"],
                params["w2"], params["b2"], params["w3"], params["b3"],
                m1, m2)

    out_padded = pl.pallas_call(
        ffn_kernel,
        out_shape=jax.ShapeDtypeStruct((B, NCP), jnp.float32),
        grid=(1,),
        in_specs=[full(a) for a in operands],
        out_specs=pl.BlockSpec((B, NCP), lambda i: (0, 0)),
        compiler_params=pltpu.CompilerParams(
            dimension_semantics=("arbitrary",)),
    )(*operands)

    # Padded class columns are exact zeros; slice to the real classes outside.
    return out_padded[:, :num_classes]


def init_params(key, input_dim, num_classes):
    """Weights stored as [in, out] (torch Linear weight transposed), zero-padded
    to 128-lane widths, bf16 for matmul operands, f32 for biases / BN params."""
    k1, k2, k3, k4, k5, k6 = jax.random.split(key, 6)
    scale = 0.1

    w2 = jax.random.normal(k3, (H1, 64), jnp.float32) * scale
    b2 = jax.random.normal(k4, (1, 64), jnp.float32) * scale
    w3 = jax.random.normal(k5, (64, num_classes), jnp.float32) * scale
    b3 = jax.random.normal(k6, (1, num_classes), jnp.float32) * scale

    # Zero-pad: padded b2 lanes are 0 so ReLU/dropout keep them at exactly 0,
    # and padded w3 rows are 0 so they contribute nothing to the output.
    w2_p = jnp.zeros((H1, H2P), jnp.float32).at[:, :64].set(w2)
    b2_p = jnp.zeros((1, H2P), jnp.float32).at[:, :64].set(b2)
    w3_p = jnp.zeros((H2P, NCP), jnp.float32).at[:64, :num_classes].set(w3)
    b3_p = jnp.zeros((1, NCP), jnp.float32).at[:, :num_classes].set(b3)

    return {
        "w1": (jax.random.normal(k1, (input_dim, H1), jnp.float32) * scale
               ).astype(jnp.bfloat16),
        "b1": jax.random.normal(k2, (1, H1), jnp.float32) * scale,
        "gamma": jnp.ones((1, H1), jnp.float32),   # BatchNorm1d weight
        "beta": jnp.zeros((1, H1), jnp.float32),   # BatchNorm1d bias
        "w2": w2_p.astype(jnp.bfloat16),
        "b2": b2_p,
        "w3": w3_p.astype(jnp.bfloat16),
        "b3": b3_p,
    }


if __name__ == "__main__":
    key = jax.random.PRNGKey(0)
    kx, kp, kd = jax.random.split(key, 3)

    B, input_dim, num_classes = 8, 32, 10
    x = jax.random.normal(kx, (B, input_dim), jnp.float32)
    params = init_params(kp, input_dim, num_classes)

    out = ffn_forward(x, params, kd, num_classes)
    jax.block_until_ready(out)
    assert out.shape == (B, num_classes) and out.dtype == jnp.float32
    assert bool(jnp.all(jnp.isfinite(out)))
    print("KERNEL_OK")
</pallas_src>

<mosaic_0001>
module attributes {stable_mosaic.version = 11 : i64} {
  func.func @ffn_kernel(%arg0: i32, %arg1: memref<8x32xbf16, #tpu.memory_space<vmem>>, %arg2: memref<32x128xbf16, #tpu.memory_space<vmem>>, %arg3: memref<1x128xf32, #tpu.memory_space<vmem>>, %arg4: memref<1x128xf32, #tpu.memory_space<vmem>>, %arg5: memref<1x128xf32, #tpu.memory_space<vmem>>, %arg6: memref<128x128xbf16, #tpu.memory_space<vmem>>, %arg7: memref<1x128xf32, #tpu.memory_space<vmem>>, %arg8: memref<128x128xbf16, #tpu.memory_space<vmem>>, %arg9: memref<1x128xf32, #tpu.memory_space<vmem>>, %arg10: memref<8x128xf32, #tpu.memory_space<vmem>>, %arg11: memref<8x128xf32, #tpu.memory_space<vmem>>, %arg12: memref<8x128xf32, #tpu.memory_space<vmem>>) attributes {dimension_semantics = [#tpu.dimension_semantics<arbitrary>], iteration_bounds = array<i64: 1>, scalar_prefetch = 0 : i64, scratch_operands = 0 : i64, tpu.core_type = #tpu.core_type<tc>, window_params = [{pipeline_mode = #tpu.pipeline_mode<synchronous>, transform_indices = @transform_0, window_bounds = array<i64: 8, 32>}, {pipeline_mode = #tpu.pipeline_mode<synchronous>, transform_indices = @transform_1, window_bounds = array<i64: 32, 128>}, {pipeline_mode = #tpu.pipeline_mode<synchronous>, transform_indices = @transform_2, window_bounds = array<i64: 1, 128>}, {pipeline_mode = #tpu.pipeline_mode<synchronous>, transform_indices = @transform_3, window_bounds = array<i64: 1, 128>}, {pipeline_mode = #tpu.pipeline_mode<synchronous>, transform_indices = @transform_4, window_bounds = array<i64: 1, 128>}, {pipeline_mode = #tpu.pipeline_mode<synchronous>, transform_indices = @transform_5, window_bounds = array<i64: 128, 128>}, {pipeline_mode = #tpu.pipeline_mode<synchronous>, transform_indices = @transform_6, window_bounds = array<i64: 1, 128>}, {pipeline_mode = #tpu.pipeline_mode<synchronous>, transform_indices = @transform_7, window_bounds = array<i64: 128, 128>}, {pipeline_mode = #tpu.pipeline_mode<synchronous>, transform_indices = @transform_8, window_bounds = array<i64: 1, 128>}, {pipeline_mode = #tpu.pipeline_mode<synchronous>, transform_indices = @transform_9, window_bounds = array<i64: 8, 128>}, {pipeline_mode = #tpu.pipeline_mode<synchronous>, transform_indices = @transform_10, window_bounds = array<i64: 8, 128>}, {pipeline_mode = #tpu.pipeline_mode<synchronous>, transform_indices = @transform_11, window_bounds = array<i64: 8, 128>}]} {
    %c0 = arith.constant 0 : index
    %c0_0 = arith.constant 0 : index
    %0 = vector.load %arg1[%c0, %c0_0] : memref<8x32xbf16, #tpu.memory_space<vmem>>, vector<8x32xbf16>
    %c0_1 = arith.constant 0 : index
    %c0_2 = arith.constant 0 : index
    %1 = vector.load %arg2[%c0_1, %c0_2] : memref<32x128xbf16, #tpu.memory_space<vmem>>, vector<32x128xbf16>
    %cst = arith.constant dense<0.000000e+00> : vector<8x128xf32>
    %2 = tpu.matmul %0, %1, %cst {dimension_numbers = #tpu.dot_dimension_numbers<[1], [0], [0], [1], [0, 0, 1, 1], [], []>} : vector<8x32xbf16>, vector<32x128xbf16>, vector<8x128xf32> -> vector<8x128xf32>
    %c0_3 = arith.constant 0 : index
    %c0_4 = arith.constant 0 : index
    %3 = vector.load %arg3[%c0_3, %c0_4] : memref<1x128xf32, #tpu.memory_space<vmem>>, vector<1x128xf32>
    %4 = vector.broadcast %3 : vector<1x128xf32> to vector<8x128xf32>
    %5 = arith.addf %2, %4 : vector<8x128xf32>
    %cst_5 = arith.constant 0.000000e+00 : f32
    %6 = vector.broadcast %cst_5 : f32 to vector<8x128xf32>
    %7 = arith.maximumf %5, %6 : vector<8x128xf32>
    %cst_6 = arith.constant dense<0.000000e+00> : vector<128xf32>
    %8 = vector.multi_reduction <add>, %7, %cst_6 [0] : vector<8x128xf32> to vector<128xf32>
    %9 = vector.shape_cast %8 : vector<128xf32> to vector<1x128xf32>
    %cst_7 = arith.constant 1.250000e-01 : f32
    %10 = vector.broadcast %cst_7 : f32 to vector<1x128xf32>
    %11 = arith.mulf %9, %10 : vector<1x128xf32>
    %12 = arith.mulf %7, %7 : vector<8x128xf32>
    %cst_8 = arith.constant dense<0.000000e+00> : vector<128xf32>
    %13 = vector.multi_reduction <add>, %12, %cst_8 [0] : vector<8x128xf32> to vector<128xf32>
    %14 = vector.shape_cast %13 : vector<128xf32> to vector<1x128xf32>
    %cst_9 = arith.constant 1.250000e-01 : f32
    %15 = vector.broadcast %cst_9 : f32 to vector<1x128xf32>
    %16 = arith.mulf %14, %15 : vector<1x128xf32>
    %17 = arith.mulf %11, %11 : vector<1x128xf32>
    %18 = arith.subf %16, %17 : vector<1x128xf32>
    %19 = vector.broadcast %11 : vector<1x128xf32> to vector<8x128xf32>
    %20 = arith.subf %7, %19 : vector<8x128xf32>
    %cst_10 = arith.constant 9.99999974E-6 : f32
    %21 = vector.broadcast %cst_10 : f32 to vector<1x128xf32>
    %22 = arith.addf %18, %21 : vector<1x128xf32>
    %23 = math.rsqrt %22 : vector<1x128xf32>
    %24 = vector.broadcast %23 : vector<1x128xf32> to vector<8x128xf32>
    %25 = arith.mulf %20, %24 : vector<8x128xf32>
    %c0_11 = arith.constant 0 : index
    %c0_12 = arith.constant 0 : index
    %26 = vector.load %arg4[%c0_11, %c0_12] : memref<1x128xf32, #tpu.memory_space<vmem>>, vector<1x128xf32>
    %27 = vector.broadcast %26 : vector<1x128xf32> to vector<8x128xf32>
    %28 = arith.mulf %25, %27 : vector<8x128xf32>
    %c0_13 = arith.constant 0 : index
    %c0_14 = arith.constant 0 : index
    %29 = vector.load %arg5[%c0_13, %c0_14] : memref<1x128xf32, #tpu.memory_space<vmem>>, vector<1x128xf32>
    %30 = vector.broadcast %29 : vector<1x128xf32> to vector<8x128xf32>
    %31 = arith.addf %28, %30 : vector<8x128xf32>
    %c0_15 = arith.constant 0 : index
    %c0_16 = arith.constant 0 : index
    %32 = vector.load %arg10[%c0_15, %c0_16] : memref<8x128xf32, #tpu.memory_space<vmem>>, vector<8x128xf32>
    %33 = arith.mulf %31, %32 : vector<8x128xf32>
    %34 = arith.truncf %33 : vector<8x128xf32> to vector<8x128xbf16>
    %c0_17 = arith.constant 0 : index
    %c0_18 = arith.constant 0 : index
    %35 = vector.load %arg6[%c0_17, %c0_18] : memref<128x128xbf16, #tpu.memory_space<vmem>>, vector<128x128xbf16>
    %cst_19 = arith.constant dense<0.000000e+00> : vector<8x128xf32>
    %36 = tpu.matmul %34, %35, %cst_19 {dimension_numbers = #tpu.dot_dimension_numbers<[1], [0], [0], [1], [0, 0, 1, 1], [], []>} : vector<8x128xbf16>, vector<128x128xbf16>, vector<8x128xf32> -> vector<8x128xf32>
    %c0_20 = arith.constant 0 : index
    %c0_21 = arith.constant 0 : index
    %37 = vector.load %arg7[%c0_20, %c0_21] : memref<1x128xf32, #tpu.memory_space<vmem>>, vector<1x128xf32>
    %38 = vector.broadcast %37 : vector<1x128xf32> to vector<8x128xf32>
    %39 = arith.addf %36, %38 : vector<8x128xf32>
    %cst_22 = arith.constant 0.000000e+00 : f32
    %40 = vector.broadcast %cst_22 : f32 to vector<8x128xf32>
    %41 = arith.maximumf %39, %40 : vector<8x128xf32>
    %c0_23 = arith.constant 0 : index
    %c0_24 = arith.constant 0 : index
    %42 = vector.load %arg11[%c0_23, %c0_24] : memref<8x128xf32, #tpu.memory_space<vmem>>, vector<8x128xf32>
    %43 = arith.mulf %41, %42 : vector<8x128xf32>
    %44 = arith.truncf %43 : vector<8x128xf32> to vector<8x128xbf16>
    %c0_25 = arith.constant 0 : index
    %c0_26 = arith.constant 0 : index
    %45 = vector.load %arg8[%c0_25, %c0_26] : memref<128x128xbf16, #tpu.memory_space<vmem>>, vector<128x128xbf16>
    %cst_27 = arith.constant dense<0.000000e+00> : vector<8x128xf32>
    %46 = tpu.matmul %44, %45, %cst_27 {dimension_numbers = #tpu.dot_dimension_numbers<[1], [0], [0], [1], [0, 0, 1, 1], [], []>} : vector<8x128xbf16>, vector<128x128xbf16>, vector<8x128xf32> -> vector<8x128xf32>
    %c0_28 = arith.constant 0 : index
    %c0_29 = arith.constant 0 : index
    %47 = vector.load %arg9[%c0_28, %c0_29] : memref<1x128xf32, #tpu.memory_space<vmem>>, vector<1x128xf32>
    %48 = vector.broadcast %47 : vector<1x128xf32> to vector<8x128xf32>
    %49 = arith.addf %46, %48 : vector<8x128xf32>
    %c0_30 = arith.constant 0 : index
    %c0_31 = arith.constant 0 : index
    %50 = vector.load %arg12[%c0_30, %c0_31] : memref<8x128xf32, #tpu.memory_space<vmem>>, vector<8x128xf32>
    tpu.vector_store %arg12[%c0_30, %c0_31], %49 {strides = array<i32>} : memref<8x128xf32, #tpu.memory_space<vmem>>, vector<8x128xf32>,
    return
  }
  func.func @transform_0(%arg0: i32) -> (i32, i32) {
    %c0_i32 = arith.constant 0 : i32
    %c0_i32_0 = arith.constant 0 : i32
    %c0_i32_1 = arith.constant 0 : i32
    return %c0_i32, %c0_i32_0 : i32, i32
  }
  func.func @transform_1(%arg0: i32) -> (i32, i32) {
    %c0_i32 = arith.constant 0 : i32
    %c0_i32_0 = arith.constant 0 : i32
    %c0_i32_1 = arith.constant 0 : i32
    return %c0_i32, %c0_i32_0 : i32, i32
  }
  func.func @transform_2(%arg0: i32) -> (i32, i32) {
    %c0_i32 = arith.constant 0 : i32
    %c0_i32_0 = arith.constant 0 : i32
    %c0_i32_1 = arith.constant 0 : i32
    return %c0_i32, %c0_i32_0 : i32, i32
  }
  func.func @transform_3(%arg0: i32) -> (i32, i32) {
    %c0_i32 = arith.constant 0 : i32
    %c0_i32_0 = arith.constant 0 : i32
    %c0_i32_1 = arith.constant 0 : i32
    return %c0_i32, %c0_i32_0 : i32, i32
  }
  func.func @transform_4(%arg0: i32) -> (i32, i32) {
    %c0_i32 = arith.constant 0 : i32
    %c0_i32_0 = arith.constant 0 : i32
    %c0_i32_1 = arith.constant 0 : i32
    return %c0_i32, %c0_i32_0 : i32, i32
  }
  func.func @transform_5(%arg0: i32) -> (i32, i32) {
    %c0_i32 = arith.constant 0 : i32
    %c0_i32_0 = arith.constant 0 : i32
    %c0_i32_1 = arith.constant 0 : i32
    return %c0_i32, %c0_i32_0 : i32, i32
  }
  func.func @transform_6(%arg0: i32) -> (i32, i32) {
    %c0_i32 = arith.constant 0 : i32
    %c0_i32_0 = arith.constant 0 : i32
    %c0_i32_1 = arith.constant 0 : i32
    return %c0_i32, %c0_i32_0 : i32, i32
  }
  func.func @transform_7(%arg0: i32) -> (i32, i32) {
    %c0_i32 = arith.constant 0 : i32
    %c0_i32_0 = arith.constant 0 : i32
    %c0_i32_1 = arith.constant 0 : i32
    return %c0_i32, %c0_i32_0 : i32, i32
  }
  func.func @transform_8(%arg0: i32) -> (i32, i32) {
    %c0_i32 = arith.constant 0 : i32
    %c0_i32_0 = arith.constant 0 : i32
    %c0_i32_1 = arith.constant 0 : i32
    return %c0_i32, %c0_i32_0 : i32, i32
  }
  func.func @transform_9(%arg0: i32) -> (i32, i32) {
    %c0_i32 = arith.constant 0 : i32
    %c0_i32_0 = arith.constant 0 : i32
    %c0_i32_1 = arith.constant 0 : i32
    return %c0_i32, %c0_i32_0 : i32, i32
  }
  func.func @transform_10(%arg0: i32) -> (i32, i32) {
    %c0_i32 = arith.constant 0 : i32
    %c0_i32_0 = arith.constant 0 : i32
    %c0_i32_1 = arith.constant 0 : i32
    return %c0_i32, %c0_i32_0 : i32, i32
  }
  func.func @transform_11(%arg0: i32) -> (i32, i32) {
    %c0_i32 = arith.constant 0 : i32
    %c0_i32_0 = arith.constant 0 : i32
    %c0_i32_1 = arith.constant 0 : i32
    return %c0_i32, %c0_i32_0 : i32, i32
  }
}

</mosaic_0001>

<bundles_post_ra>
// kernel: tpu_custom_call.1
= control target key start
LH: loop header
LB: loop body
LE: loop exit
PB: predicated region body
PF: predicated region fallthrough
CT: control target
= control target key end

     0   :  { %16 = vsyncpa [#allocation3], 0  ;;  %s910_s0 = inlined_call_operand.hbm [shape: bf16[8,32], index: 0, kind: input, shape index: {}]   ;;  %s911_s1 = inlined_call_operand.hbm [shape: bf16[32,128], index: 1, kind: input, shape index: {}]   ;;  %s912_s2 = inlined_call_operand.vmem [shape: f32[1,128], index: 2, kind: input, shape index: {}]   ;;  %s913_s3 = inlined_call_operand.vmem [shape: f32[1,128], index: 3, kind: input, shape index: {}]   ;;  %s914_s4 = inlined_call_operand.hbm [shape: f32[1,128], index: 4, kind: input, shape index: {}]   ;;  %s915_s5 = inlined_call_operand.hbm [shape: bf16[128,128], index: 5, kind: input, shape index: {}]   ;;  %s916_s6 = inlined_call_operand.vmem [shape: f32[1,128], index: 6, kind: input, shape index: {}]   ;;  %s917_s7 = inlined_call_operand.hbm [shape: bf16[128,128], index: 7, kind: input, shape index: {}]   ;;  %s918_s8 = inlined_call_operand.vmem [shape: f32[1,128], index: 8, kind: input, shape index: {}]   ;;  %s919_s9 = inlined_call_operand.vmem [shape: f32[8,128], index: 9, kind: input, shape index: {}]   ;;  %s920_s10 = inlined_call_operand.vmem [shape: f32[8,128], index: 10, kind: input, shape index: {}]   ;;  %s921_s11 = inlined_call_operand.hbm [shape: f32[8,128], index: 11, kind: output, shape index: {}]  }
   0x1   :  { %17 = vsyncpa [#allocation6], 0 }
   0x2   :  { %18 = vsyncpa [#allocation9], 0 }
   0x3   :  { %19 = vsyncpa [#allocation4], 0  ;;  %s720_s17 = smov [#allocation5]   ;;  %s580_s21 = scalar_lea.hbm %s911_s1, 256 }
   0x4   :  { %s35_s18 = sshll.u32 %s720_s17, 4  ;;  %p581_p0 = scmp.ne.s32.totalorder %s911_s1, %s580_s21  ;;  %s36_s18 = int_to_ptr.vmem [resolvable:$true] %s35_s18 }
   0x5   :  { %p584_p1 = scmp.lt.u32.totalorder %s580_s21, %s911_s1 }
   0x7   :  { %p586_p2 = pnand %p584_p1, %p581_p0 }
   0x9   :  { %589 = shalt.err (!%p586_p2)
}
   0xa   :  { %s590_s26 = scalar_lea.vmem %s36_s18, 256  ;;  %p595_p4 = scmp.lt.s32.totalorder %s36_s18, %s36_s18 }
   0xb   :  { %p591_p3 = scmp.ne.s32.totalorder %s36_s18, %s590_s26  ;;  %p596_p5 = scmp.lt.s32.totalorder %s590_s26, %s590_s26 }
   0xd   :  { %p597_p6 = por %p596_p5, %p595_p4 }
   0xf   :  { %p598_p7 = pnand %p597_p6, %p591_p3 }
  0x11   :  { %601 = shalt.err (!%p598_p7)
}
  0x12   :  { %s721_s27 = smov 64   ;;  %s722_s28 = smov 4  }
  0x13   :  { %41 = dma.hbm_to_vmem [thread:$0]  %s911_s1, 256, %s36_s18, [#allocation6], %s721_s27, %s721_s27, %s722_s28  }
  0x14   :  { %s723_s12 = smov [#allocation8]   ;;  %s724_s14 = smov [#allocation2]  }
  0x15   :  { %s61_s13 = sshll.u32 %s723_s12, 4  ;;  %s26_s15 = sshll.u32 %s724_s14, 4  ;;  %s62_s13 = int_to_ptr.vmem [resolvable:$true] %s61_s13  ;;  %s27_s15 = int_to_ptr.vmem [resolvable:$true] %s26_s15 }
  0x16   :  { %s602_s19 = scalar_lea.hbm %s915_s5, 1024 }
  0x17   :  { %p603_p8 = scmp.ne.s32.totalorder %s915_s5, %s602_s19  ;;  %p606_p9 = scmp.lt.u32.totalorder %s602_s19, %s915_s5 }
  0x19   :  { %p608_p10 = pnand %p606_p9, %p603_p8 }
  0x1b   :  { %611 = shalt.err (!%p608_p10)
}
  0x1c   :  { %s612_s1 = scalar_lea.vmem %s62_s13, 1024  ;;  %p617_p12 = scmp.lt.s32.totalorder %s62_s13, %s62_s13 }
  0x1d   :  { %p613_p11 = scmp.ne.s32.totalorder %s62_s13, %s612_s1  ;;  %p618_p13 = scmp.lt.s32.totalorder %s612_s1, %s612_s1 }
  0x1f   :  { %p619_p0 = por %p618_p13, %p617_p12 }
  0x21   :  { %p620_p1 = pnand %p619_p0, %p613_p11 }
  0x23   :  { %623 = shalt.err (!%p620_p1)
}
  0x24   :  { %67 = dma.hbm_to_vmem [thread:$0]  %s915_s5, 1024, %s62_s13, [#allocation9], %s721_s27, %s721_s27, %s722_s28  }
  0x25   :  { %s624_s29 = scalar_lea.hbm %s910_s0, 64 }
  0x26   :  { %p625_p2 = scmp.ne.s32.totalorder %s910_s0, %s624_s29  ;;  %p628_p3 = scmp.lt.u32.totalorder %s624_s29, %s910_s0 }
  0x28   :  { %p630_p4 = pnand %p628_p3, %p625_p2 }
  0x2a   :  { %633 = shalt.err (!%p630_p4)
}
  0x2b   :  { %s634_s17 = scalar_lea.vmem %s27_s15, 64  ;;  %p639_p6 = scmp.lt.s32.totalorder %s27_s15, %s27_s15 }
  0x2c   :  { %p635_p5 = scmp.ne.s32.totalorder %s27_s15, %s634_s17  ;;  %p640_p7 = scmp.lt.s32.totalorder %s634_s17, %s634_s17 }
  0x2e   :  { %p641_p8 = por %p640_p7, %p639_p6 }
  0x30   :  { %p642_p9 = pnand %p641_p8, %p635_p5 }
  0x32   :  { %645 = shalt.err (!%p642_p9)
}
  0x33   :  { %29 = dma.hbm_to_vmem [thread:$0]  %s910_s0, 64, %s27_s15, [#allocation3]  }
  0x34   :  { %s725_s19 = smov [#allocation7]   ;;  %s726_s21 = smov [#allocation10]  }
  0x35   :  { %s52_s20 = sshll.u32 %s725_s19, 4  ;;  %s75_s22 = sshll.u32 %s726_s21, 4  ;;  %s53_s20 = int_to_ptr.vmem [resolvable:$true] %s52_s20  ;;  %s76_s22 = int_to_ptr.vmem [resolvable:$true] %s75_s22 }
  0x36   :  { %s646_s18 = scalar_lea.hbm %s914_s4, 16 }
  0x37   :  { %p647_p10 = scmp.ne.s32.totalorder %s914_s4, %s646_s18  ;;  %p650_p11 = scmp.lt.u32.totalorder %s646_s18, %s914_s4 }
  0x39   :  { %p652_p12 = pnand %p650_p11, %p647_p10 }
  0x3b   :  { %655 = shalt.err (!%p652_p12)
}
  0x3c   :  { %s656_s0 = scalar_lea.vmem %s53_s20, 16  ;;  %s660_s15 = scalar_lea.vmem %s53_s20, 32 }
  0x3d   :  { %p657_p13 = scmp.ne.s32.totalorder %s53_s20, %s656_s0  ;;  %p661_p0 = scmp.lt.s32.totalorder %s53_s20, %s53_s20 }
  0x3e   :  { %p662_p1 = scmp.lt.s32.totalorder %s660_s15, %s656_s0 }
  0x40   :  { %p663_p2 = por %p662_p1, %p661_p0 }
  0x42   :  { %p664_p3 = pnand %p663_p2, %p657_p13 }
  0x44   :  { %667 = shalt.err (!%p664_p3)
}
  0x45   :  { %55 = dma.hbm_to_vmem [thread:$0]  %s914_s4, 16, %s53_s20, [#allocation6]  }
  0x46   :  { %s668_s17 = scalar_lea.hbm %s917_s7, 1024 }
  0x47   :  { %p669_p4 = scmp.ne.s32.totalorder %s917_s7, %s668_s17  ;;  %p672_p5 = scmp.lt.u32.totalorder %s668_s17, %s917_s7 }
  0x49   :  { %p674_p6 = pnand %p672_p5, %p669_p4 }
  0x4b   :  { %677 = shalt.err (!%p674_p6)
}
  0x4c   :  { %s678_s23 = scalar_lea.vmem %s76_s22, 1024  ;;  %p683_p8 = scmp.lt.s32.totalorder %s76_s22, %s76_s22 }
  0x4d   :  { %p679_p7 = scmp.ne.s32.totalorder %s76_s22, %s678_s23  ;;  %p684_p9 = scmp.lt.s32.totalorder %s678_s23, %s678_s23 }
  0x4f   :  { %p685_p10 = por %p684_p9, %p683_p8 }
  0x51   :  { %p686_p11 = pnand %p685_p10, %p679_p7 }
  0x53   :  { %689 = shalt.err (!%p686_p11)
}
  0x54   :  { %81 = dma.hbm_to_vmem [thread:$0]  %s917_s7, 1024, %s76_s22, [#allocation9], %s721_s27, %s721_s27, %s722_s28  }
  0x55   :  { %712 = dma.done.wait [#allocation3], 64  }
  0x56   :  { %713 = vsyncadd [#allocation3], 4294967232 }
  0x57   :  { %714 = dma.done.wait [#allocation6], 272  }
  0x58   :  { %715 = vsyncadd [#allocation6], 4294967024 }
  0x59   :  { %716 = dma.done.wait [#allocation9], 2048  }
  0x5a   :  { %717 = vsyncadd [#allocation9], 4294965248  ;;  %v727_v0 = vmov 0.0   ;;  %vm728_vm0 = vmmov 0   ;;  %v560_v1 = vld [vmem:[#allocation5] sm:$0xff]   ;;  %v561_v2 = vld [vmem:[#allocation5 + $0x8] sm:$0xff]  }
  0x5b   :  { %502 = vmatprep.subr.bf16.mxu0 %v727_v0  ;;  %506 = vmatprep.mubr.msk.bf16.mxu0 %vm728_vm0, %v727_v0  ;;  %vm128_vm1 = vcmask 261120   ;;  %v104_v3 = vld [vmem:[#allocation2] sm:$0xf]  ;;  %v562_v4 = vld [vmem:[#allocation8] sm:$0xff]   ;;  %v564_v6 = vld [vmem:[#allocation8 + $0x10] sm:$0xff]   ;;  %s729_s29 = smov [#allocation11]  }
  0x5c   :  { %510 = vmatprep.subr.bf16.mxu1 %v727_v0  ;;  %526 = vmatprep.mubr.msk.bf16.mxu1 %vm728_vm0, %v727_v0  ;;  %v563_v5 = vld [vmem:[#allocation8 + $0x8] sm:$0xff]   ;;  %v565_v7 = vld [vmem:[#allocation8 + $0x18] sm:$0xff]   ;;  %v566_v8 = vld [vmem:[#allocation8 + $0x20] sm:$0xff]   ;;  %s446_s0 = sshll.u32 %s729_s29, 4  ;;  %s447_s0 = int_to_ptr.vmem [resolvable:$true] %s446_s0 }
  0x5d   :  { %503 = vmatpush3.bf16.msra.mxu0 %v560_v1  ;;  %511 = vmatpush3.bf16.msra.mxu1 %v562_v4  ;;  %v567_v9 = vld [vmem:[#allocation8 + $0x28] sm:$0xff]   ;;  %v568_v10 = vld [vmem:[#allocation8 + $0x30] sm:$0xff]   ;;  %v569_v11 = vld [vmem:[#allocation8 + $0x38] sm:$0xff]   ;;  %p695_p13 = scmp.lt.s32.totalorder %s447_s0, %s447_s0 }
  0x5e   :  { %504 = vmatprep.subr.bf16.mxu0 %v727_v0  ;;  %512 = vmatprep.subr.bf16.mxu1 %v727_v0  ;;  %v570_v12 = vld [vmem:[#allocation10] sm:$0xff]   ;;  %v571_v13 = vld [vmem:[#allocation10 + $0x8] sm:$0xff]   ;;  %v572_v14 = vld [vmem:[#allocation10 + $0x10] sm:$0xff]  }
  0x5f   :  { %v573_v15 = vld [vmem:[#allocation10 + $0x18] sm:$0xff]   ;;  %v574_v16 = vld [vmem:[#allocation10 + $0x20] sm:$0xff]   ;;  %v575_v17 = vld [vmem:[#allocation10 + $0x28] sm:$0xff]  }
  0x60   :  { %v457_v18 = vld [vmem:[%s912_s2] ss:$0 sm:$0xff]  ;;  %v462_v47 = vld [vmem:[#allocation7] ss:$0 sm:$0xff]  ;;  %v576_v53 = vld [vmem:[#allocation10 + $0x30] sm:$0xff]  }
  0x61   :  { %505 = vmatpush3.bf16.msra.mxu0 %v561_v2  ;;  %513 = vmatpush3.bf16.msra.mxu1 %v563_v5  ;;  %v461_v45 = vld [vmem:[%s913_s3] ss:$0 sm:$0xff] }
  0x62   :  { %530 = vmatprep.subr.bf16.mxu0 %v727_v0  ;;  %514 = vmatprep.subr.bf16.mxu1 %v727_v0  ;;  %v210_v49 = vld [vmem:[%s919_s9] sm:$0xff] }
  0x63   :  { %v577_v54 = vld [vmem:[#allocation10 + $0x38] sm:$0xff]  }
  0x64   :  { %507 = vmatmul.mubr.msk.bf16.vlgmr.msra.gmra.mrb[0].mxu0 %vm128_vm1, %v104_v3  ;;  %v463_v55 = vld [vmem:[%s916_s6] ss:$0 sm:$0xff]  ;;  %s690_s6 = scalar_lea.vmem %s447_s0, 128 }
  0x65   :  { %546 = vmatprep.mubr.msk.bf16.mxu0 %vm728_vm0, %v727_v0  ;;  %515 = vmatpush3.bf16.msra.mxu1 %v564_v6  ;;  %v325_v59 = vld [vmem:[%s920_s10] sm:$0xff]  ;;  %p691_p12 = scmp.ne.s32.totalorder %s447_s0, %s690_s6  ;;  %p696_p0 = scmp.lt.s32.totalorder %s690_s6, %s690_s6 }
  0x66   :  { %516 = vmatprep.subr.bf16.mxu1 %v727_v0  ;;  %531 = vmatpush3.bf16.msra.mxu0 %v570_v12 }
  0x67   :  { %532 = vmatprep.subr.bf16.mxu0 %v727_v0  ;;  %p697_p1 = por %p696_p0, %p695_p13 }
  0x69   :  { %517 = vmatpush3.bf16.msra.mxu1 %v565_v7  ;;  %p698_p2 = pnand %p697_p1, %p691_p12 }
  0x6a   :  { %518 = vmatprep.subr.bf16.mxu1 %v727_v0  ;;  %533 = vmatpush3.bf16.msra.mxu0 %v571_v13 }
  0x6b   :  { %534 = vmatprep.subr.bf16.mxu0 %v727_v0 }
  0x6d   :  { %519 = vmatpush3.bf16.msra.mxu1 %v566_v8 }
  0x6e   :  { %520 = vmatprep.subr.bf16.mxu1 %v727_v0  ;;  %535 = vmatpush3.bf16.msra.mxu0 %v572_v14 }
  0x6f   :  { %536 = vmatprep.subr.bf16.mxu0 %v727_v0 }
  0x71   :  { %521 = vmatpush3.bf16.msra.mxu1 %v567_v9 }
  0x72   :  { %522 = vmatprep.subr.bf16.mxu1 %v727_v0  ;;  %537 = vmatpush3.bf16.msra.mxu0 %v573_v15 }
  0x73   :  { %538 = vmatprep.subr.bf16.mxu0 %v727_v0 }
  0x75   :  { %523 = vmatpush3.bf16.msra.mxu1 %v568_v10 }
  0x76   :  { %524 = vmatprep.subr.bf16.mxu1 %v727_v0  ;;  %539 = vmatpush3.bf16.msra.mxu0 %v574_v16 }
  0x77   :  { %540 = vmatprep.subr.bf16.mxu0 %v727_v0 }
  0x79   :  { %525 = vmatpush3.bf16.msra.mxu1 %v569_v11 }
  0x7a   :  { %541 = vmatpush3.bf16.msra.mxu0 %v575_v17 }
  0x7b   :  { %542 = vmatprep.subr.bf16.mxu0 %v727_v0 }
  0x7e   :  { %543 = vmatpush3.bf16.msra.mxu0 %v576_v53 }
  0x7f   :  { %544 = vmatprep.subr.bf16.mxu0 %v727_v0  ;;  %v472_v0 = vld [vmem:[%s918_s8] ss:$0 sm:$0xff] }
  0x82   :  { %545 = vmatpush3.bf16.msra.mxu0 %v577_v54 }
 0x137   :  { %v166_v19 = vpop.f32.mrb[0].mxu0 }
 0x138   :  { %v167_v20 = vadd.f32 %v457_v18, %v166_v19  ;;  %v508_v21 = vpop.f32.mrb[1].mxu0 }
 0x139   :  { %v169_v22 = vpop.f32.mrb[2].mxu0 }
 0x13a   :  { %v172_v23 = vmax.f32 %v167_v20, 0.0  ;;  %v509_v24 = vpop.f32.mrb[3].mxu0 }
 0x13c   :  { %v173_v25 = vrot.slane %v172_v23, 4  ;;  %v180_v26 = vmul.f32 %v172_v23, %v172_v23 }
 0x13e   :  { %v174_v27 = vadd.f32 %v173_v25, %v172_v23  ;;  %v181_v28 = vrot.slane %v180_v26, 4 }
 0x140   :  { %v175_v29 = vrot.slane %v174_v27, 2  ;;  %v182_v30 = vadd.f32 %v181_v28, %v180_v26 }
 0x142   :  { %v176_v31 = vadd.f32 %v175_v29, %v174_v27  ;;  %v183_v32 = vrot.slane %v182_v30, 2 }
 0x144   :  { %v177_v33 = vrot.slane %v176_v31, 1  ;;  %v184_v34 = vadd.f32 %v183_v32, %v182_v30 }
 0x146   :  { %v178_v35 = vadd.f32 %v177_v33, %v176_v31  ;;  %v185_v36 = vrot.slane %v184_v34, 1 }
 0x148   :  { %v179_v37 = vmul.f32 0.125, %v178_v35  ;;  %v186_v38 = vadd.f32 %v185_v36, %v184_v34 }
 0x14a   :  { %v187_v39 = vmul.f32 0.125, %v186_v38  ;;  %v188_v40 = vmul.f32 %v179_v37, %v179_v37  ;;  %v190_v43 = vsub.f32 %v172_v23, %v179_v37 }
 0x14c   :  { %v189_v41 = vsub.f32 %v187_v39, %v188_v40 }
 0x14e   :  { %v191_v42 = vadd.f32 1e-05, %v189_v41 }
 0x150   :  { %578 = vrsqrt.f32 %v191_v42 }
 0x15a   :  { %v579_v44 = vpop.eup %578 }
 0x15b   :  { %v193_v46 = vmul.f32 %v579_v44, %v190_v43 }
 0x15d   :  { %v201_v48 = vmul.f32 %v461_v45, %v193_v46 }
 0x15f   :  { %v209_v50 = vadd.f32 %v462_v47, %v201_v48 }
 0x161   :  { %v211_v51 = vmul.f32 %v210_v49, %v209_v50 }
 0x163   :  { %v212_v52 = vpack.c.bf16 %v211_v51, %v211_v51 }
 0x165   :  { %527 = vmatmul.mubr.bf16.vlgmr.msra.gmra.mrb[0].mxu1 %v212_v52 }
 0x238   :  { %v318_v56 = vpop.f32.mrb[0].mxu1 }
 0x239   :  { %v319_v57 = vadd.f32 %v463_v55, %v318_v56  ;;  %v528_v58 = vpop.f32.mrb[1].mxu1 }
 0x23a   :  { %v321_v60 = vpop.f32.mrb[2].mxu1 }
 0x23b   :  { %v324_v61 = vmax.f32 %v319_v57, 0.0  ;;  %v529_v62 = vpop.f32.mrb[3].mxu1 }
 0x23d   :  { %v326_v63 = vmul.f32 %v325_v59, %v324_v61 }
 0x23f   :  { %v327_v1 = vpack.c.bf16 %v326_v63, %v326_v63 }
 0x241   :  { %547 = vmatmul.mubr.bf16.vlgmr.msra.gmra.mrb[4].mxu0 %v327_v1 }
 0x314   :  { %v433_v2 = vpop.f32.mrb[4].mxu0 }
 0x315   :  { %v434_v3 = vadd.f32 %v472_v0, %v433_v2  ;;  %v548_v4 = vpop.f32.mrb[5].mxu0 }
 0x316   :  { %v436_v5 = vpop.f32.mrb[6].mxu0 }
 0x317   :  { %439 = vst [vmem:[#allocation11] sm:$0xff] %v434_v3  ;;  %v549_v6 = vpop.f32.mrb[7].mxu0 }
 0x318   :  { %701 = shalt.err (!%p698_p2)
}
 0x319   :  { %s702_s8 = scalar_lea.hbm %s921_s11, 128 }
 0x31a   :  { %p703_p3 = scmp.ne.s32.totalorder %s921_s11, %s702_s8  ;;  %p706_p4 = scmp.lt.u32.totalorder %s702_s8, %s921_s11 }
 0x31c   :  { %p708_p5 = pnand %p706_p4, %p703_p3 }
 0x31e   :  { %711 = shalt.err (!%p708_p5)
}
 0x31f   :  { %449 = dma.vmem_to_hbm [thread:$0]  %s447_s0, 128, %s921_s11, [#allocation4]  }
 0x320   :  { %718 = dma.done.wait [#allocation4], 128  }
 0x321   :  { %719 = vsyncadd [#allocation4], 4294967168 }
 0x322   :  { %453 = vsyncpa [#allocation3], 1 }
 0x323   :  { %454 = vsyncpa [#allocation6], 1 }
 0x324   :  { %455 = vsyncpa [#allocation9], 1 }
 0x325   :  { %456 = vsyncpa [#allocation4], 1 }

</bundles_post_ra>
